<compile_context>
chip_gen: v5e
topology: v5e:2x2
jax: 0.10.0
libtpu: 0.0.40
codegen_flags: <defaults>
</compile_context>

<pallas_src>
import jax
import jax.numpy as jnp
from jax.experimental import pallas as pl
from jax.experimental.pallas import tpu as pltpu


def _round_up(n, m):
    return ((n + m - 1) // m) * m


def _bpe(dt):
    return jnp.dtype(dt).itemsize


def _sublane(dt):
    # sublane packing: 8 rows for 32-bit, 16 for 16-bit, 32 for 8-bit dtypes
    return 8 * max(1, 4 // _bpe(dt))


def _vmem_budget_bytes():
    """Usable VMEM budget for this generation, with compiler headroom."""
    try:
        cap = int(pltpu.get_tpu_info().vmem_capacity_bytes)
    except Exception:
        cap = 128 << 20
    if cap <= (64 << 20):            # v7x-class: 64 MiB physical
        return cap - (8 << 20)       # ~56 MiB usable
    return int(cap * 0.8)            # v5e/v6e: ~102 MiB of 128 MiB


# ---------------------------------------------------------------------------
# Kernels
# ---------------------------------------------------------------------------

def _ae_resident_kernel(x_ref, we_ref, wd_ref, bd_ref, be_ref,
                        recon_ref, feat_ref):
    """Weights-resident path: 1-D grid over batch tiles, full F per step."""
    pre = jnp.dot(x_ref[...], we_ref[...],
                  preferred_element_type=jnp.float32) + be_ref[...]
    feat = jnp.maximum(pre, 0.0)                      # f32 epilogue (v5e-safe)
    feat_ref[...] = feat.astype(feat_ref.dtype)
    recon = jnp.dot(feat.astype(wd_ref.dtype), wd_ref[...],
                    preferred_element_type=jnp.float32)
    recon_ref[...] = (recon + bd_ref[...]).astype(recon_ref.dtype)


def _ae_tiled_kernel_inplace(x_ref, we_ref, wd_ref, bd_ref, be_ref,
                             recon_ref, feat_ref):
    """Tiled path, f32 recon: accumulate straight into the resident output."""
    f = pl.program_id(1)
    pre = jnp.dot(x_ref[...], we_ref[...],
                  preferred_element_type=jnp.float32) + be_ref[...]
    feat = jnp.maximum(pre, 0.0)
    feat_ref[...] = feat.astype(feat_ref.dtype)
    partial = jnp.dot(feat.astype(wd_ref.dtype), wd_ref[...],
                      preferred_element_type=jnp.float32)

    @pl.when(f == 0)
    def _():
        recon_ref[...] = partial + bd_ref[...]

    @pl.when(f != 0)
    def _():
        recon_ref[...] += partial


def _ae_tiled_kernel_scratch(x_ref, we_ref, wd_ref, bd_ref, be_ref,
                             recon_ref, feat_ref, acc_ref):
    """Tiled path, non-f32 recon: accumulate in an f32 VMEM scratch."""
    f = pl.program_id(1)

    @pl.when(f == 0)
    def _():
        acc_ref[...] = jnp.zeros_like(acc_ref)

    pre = jnp.dot(x_ref[...], we_ref[...],
                  preferred_element_type=jnp.float32) + be_ref[...]
    feat = jnp.maximum(pre, 0.0)
    feat_ref[...] = feat.astype(feat_ref.dtype)
    acc_ref[...] += jnp.dot(feat.astype(wd_ref.dtype), wd_ref[...],
                            preferred_element_type=jnp.float32)

    @pl.when(f == pl.num_programs(1) - 1)
    def _():
        recon_ref[...] = (acc_ref[...] + bd_ref[...]).astype(recon_ref.dtype)


# ---------------------------------------------------------------------------
# Wrapper
# ---------------------------------------------------------------------------

def autoencoder_forward(x, W_e, W_d, b_d, b_e, *,
                        block_b=1024, block_f=512,
                        compute_dtype=jnp.bfloat16,
                        out_dtype=None, feat_dtype=None,
                        resident=None):
    """Tied-bias autoencoder forward.

    x: (B, n_activations); W_e: (n_features, n_activations);
    W_d: (n_activations, n_features); b_d: (n_activations,); b_e: (n_features,).

    compute_dtype: matmul-operand dtype (default bf16 -> MXU peak on all
      generations); accumulation is always f32 and the bias/ReLU epilogue is
      f32, so bf16 only changes operand rounding vs the f32 PyTorch reference.
    out_dtype / feat_dtype: dtypes of reconstruction / features outputs
      (default x.dtype).
    resident: None=auto, True/False force the weights-resident / tiled path.

    Returns (reconstruction, features).
    """
    B, A = x.shape
    F = W_e.shape[0]
    out_dtype = jnp.dtype(x.dtype) if out_dtype is None else jnp.dtype(out_dtype)
    feat_dtype = out_dtype if feat_dtype is None else jnp.dtype(feat_dtype)
    compute_dtype = jnp.dtype(compute_dtype)

    bpe_c = _bpe(compute_dtype)
    bpe_w = bpe_c   # TODO(synk): optional fp8 weight path on v7x (mixed-dtype MXU)
    bpe_o = _bpe(out_dtype)
    bpe_f = _bpe(feat_dtype)
    sub = max(_sublane(compute_dtype), _sublane(out_dtype), _sublane(feat_dtype))

    # Fold the shared decoder bias into the encoder bias, in f32:
    #   (x - b_d) @ W_e.T + b_e == x @ W_e.T + (b_e - W_e @ b_d)
    # NOTE: for static weights, hoist/cache this prep (fold + transpose + cast)
    # outside the hot path; it is a full HBM pass over both weight matrices.
    b_e_eff = (b_e.astype(jnp.float32)
               - jnp.dot(W_e.astype(jnp.float32), b_d.astype(jnp.float32)))
    W_e_t = W_e.T.astype(compute_dtype)          # (A, F)
    W_d_t = W_d.T.astype(compute_dtype)          # (F, A)
    x_c = x.astype(compute_dtype)

    budget = _vmem_budget_bytes()
    Fp0 = _round_up(F, 128)

    # ---- tile_b candidates (sublane-aligned, descending) ----
    tb_cap = max(sub, min(_round_up(block_b, sub), _round_up(B, sub)))
    cands = {tb_cap, sub}
    for v in (1024, 768, 512, 384, 256, 192, 128, 96, 64, 48, 32, 16, 8):
        v = _round_up(v, sub)
        if sub <= v <= tb_cap:
            cands.add(v)
    cands = sorted(cands, reverse=True)

    w_all_bytes = 2 * A * Fp0 * bpe_w + (A + Fp0) * 4

    def resident_bytes(tb):
        io = tb * A * bpe_c + tb * A * bpe_o + tb * Fp0 * bpe_f
        tmp = tb * Fp0 * (4 + bpe_c) + tb * A * 4     # pre/feat + recon temps
        return 2 * (w_all_bytes + io) + tmp           # x2: double-buffering

    def tiled_bytes(tb, tf, with_scr):
        w = 2 * A * tf * bpe_w + (A + tf) * 4
        io = tb * A * bpe_c + tb * A * bpe_o + tb * tf * bpe_f
        tmp = tb * tf * (4 + bpe_c) + tb * A * 4
        if with_scr:
            tmp += tb * A * 4                          # f32 accumulator scratch
        return 2 * (w + io) + tmp

    use_resident = resident
    tile_b = None
    tile_f = None

    if use_resident is None or use_resident:
        for tb in cands:
            if resident_bytes(tb) <= budget:
                tile_b = tb
                break
        if use_resident is None:
            use_resident = tile_b is not None
        elif tile_b is None:              # forced resident: best effort
            tile_b = cands[-1]

    if not use_resident:
        with_scratch = out_dtype != jnp.float32
        tf = min(_round_up(block_f, 128), Fp0)
        while True:
            for tb in cands:
                if tiled_bytes(tb, tf, with_scratch) <= budget:
                    tile_b, tile_f = tb, tf
                    break
            if tile_b is not None or tf <= 128:
                break
            tf = max(128, _round_up(tf // 2, 128))
        if tile_b is None:
            # TODO(synk): tile the A (n_activations) axis for very large d_model
            tile_b, tile_f = cands[-1], 128

    # Keep >= 2 batch tiles when worthwhile so the "parallel" batch axis can
    # shard across v7x's two TensorCores.
    if _round_up(B, tile_b) // tile_b == 1 and tile_b >= 2 * max(sub, 128):
        tile_b = _round_up((B + 1) // 2, sub)

    Fp = Fp0 if use_resident else _round_up(F, tile_f)
    Bp = _round_up(B, tile_b)

    if Fp != F:
        W_e_t = jnp.pad(W_e_t, ((0, 0), (0, Fp - F)))
        W_d_t = jnp.pad(W_d_t, ((0, Fp - F), (0, 0)))
        b_e_eff = jnp.pad(b_e_eff, ((0, Fp - F),))
    if Bp != B:
        x_c = jnp.pad(x_c, ((0, Bp - B), (0, 0)))

    b_d_2d = b_d.astype(jnp.float32).reshape(1, A)
    b_e_2d = b_e_eff.reshape(1, Fp)
    n_b = Bp // tile_b

    if use_resident:
        grid = (n_b,)
        in_specs = [
            pl.BlockSpec((tile_b, A), lambda b: (b, 0)),     # x tile
            pl.BlockSpec((A, Fp), lambda b: (0, 0)),         # W_e.T (resident)
            pl.BlockSpec((Fp, A), lambda b: (0, 0)),         # W_d.T (resident)
            pl.BlockSpec((1, A), lambda b: (0, 0)),          # b_d
            pl.BlockSpec((1, Fp), lambda b: (0, 0)),         # b_e_eff
        ]
        out_specs = (
            pl.BlockSpec((tile_b, A), lambda b: (b, 0)),     # reconstruction
            pl.BlockSpec((tile_b, Fp), lambda b: (b, 0)),    # features
        )
        scratch_shapes = []
        kernel = _ae_resident_kernel
        dim_sem = ("parallel",)
        weight_passes = 1
    else:
        n_f = Fp // tile_f
        grid = (n_b, n_f)
        in_specs = [
            pl.BlockSpec((tile_b, A), lambda b, f: (b, 0)),       # x tile
            pl.BlockSpec((A, tile_f), lambda b, f: (0, f)),       # W_e.T tile
            pl.BlockSpec((tile_f, A), lambda b, f: (f, 0)),       # W_d.T tile
            pl.BlockSpec((1, A), lambda b, f: (0, 0)),            # b_d
            pl.BlockSpec((1, tile_f), lambda b, f: (0, f)),       # b_e_eff tile
        ]
        out_specs = (
            pl.BlockSpec((tile_b, A), lambda b, f: (b, 0)),       # recon (resident over f)
            pl.BlockSpec((tile_b, tile_f), lambda b, f: (b, f)),  # features
        )
        if with_scratch:
            scratch_shapes = [pltpu.VMEM((tile_b, A), jnp.float32)]
            kernel = _ae_tiled_kernel_scratch
        else:
            scratch_shapes = []
            kernel = _ae_tiled_kernel_inplace
        dim_sem = ("parallel", "arbitrary")
        weight_passes = n_b

    cost = pl.CostEstimate(
        flops=4 * Bp * A * Fp,                                 # two GEMMs
        transcendentals=0,
        bytes_accessed=(Bp * A * bpe_c
                        + weight_passes * 2 * A * Fp * bpe_w   # true weight streaming
                        + (A + Fp) * 4
                        + Bp * A * bpe_o
                        + Bp * Fp * bpe_f))

    recon, feat = pl.pallas_call(
        kernel,
        out_shape=(
            jax.ShapeDtypeStruct((Bp, A), out_dtype),     # reconstruction
            jax.ShapeDtypeStruct((Bp, Fp), feat_dtype),   # features
        ),
        grid_spec=pltpu.PrefetchScalarGridSpec(
            num_scalar_prefetch=0,
            grid=grid,
            in_specs=in_specs,
            out_specs=out_specs,
            scratch_shapes=scratch_shapes,
        ),
        compiler_params=pltpu.CompilerParams(
            dimension_semantics=dim_sem,
            vmem_limit_bytes=int(budget),
        ),
        cost_estimate=cost,
    )(x_c, W_e_t, W_d_t, b_d_2d, b_e_2d)

    return recon[:B], feat[:B, :F]


if __name__ == "__main__":
    # Small shapes consistent with the module.
    batch = 16
    n_activations = 128
    n_features = 256

    key = jax.random.PRNGKey(0)
    kx, kwe, kwd, kbd, kbe = jax.random.split(key, 5)

    x = jax.random.normal(kx, (batch, n_activations), dtype=jnp.float32)
    W_e = jax.random.normal(kwe, (n_features, n_activations), jnp.float32) * 0.05
    W_d = jax.random.normal(kwd, (n_activations, n_features), jnp.float32) * 0.05
    b_d = jax.random.normal(kbd, (n_activations,), jnp.float32) * 0.1
    b_e = jax.random.normal(kbe, (n_features,), jnp.float32) * 0.1

    # Pure-JAX reference (mirrors the PyTorch module).
    feat_ref = jnp.maximum((x - b_d) @ W_e.T + b_e, 0.0)
    recon_ref = feat_ref @ W_d.T + b_d

    # 1) f32 compute, weights-resident path (tight tolerance vs the module).
    recon, feat = autoencoder_forward(x, W_e, W_d, b_d, b_e,
                                      compute_dtype=jnp.float32, resident=True)
    jax.block_until_ready((recon, feat))
    assert recon.shape == (batch, n_activations)
    assert feat.shape == (batch, n_features)
    assert jnp.allclose(feat, feat_ref, atol=1e-4, rtol=1e-4)
    assert jnp.allclose(recon, recon_ref, atol=1e-4, rtol=1e-4)

    # 2) f32 compute, forced tiled fallback (grid (2,2), accumulate-in-recon).
    recon_t, feat_t = autoencoder_forward(x, W_e, W_d, b_d, b_e,
                                          compute_dtype=jnp.float32,
                                          resident=False,
                                          block_b=8, block_f=128)
    jax.block_until_ready((recon_t, feat_t))
    assert jnp.allclose(feat_t, feat_ref, atol=1e-4, rtol=1e-4)
    assert jnp.allclose(recon_t, recon_ref, atol=1e-4, rtol=1e-4)

    # 3) default path: bf16 operands / f32 accumulate, auto (resident) tiling.
    recon_bf, feat_bf = autoencoder_forward(x, W_e, W_d, b_d, b_e)
    jax.block_until_ready((recon_bf, feat_bf))
    assert jnp.allclose(feat_bf, feat_ref, atol=1e-1, rtol=1e-1)
    assert jnp.allclose(recon_bf, recon_ref, atol=1e-1, rtol=1e-1)

    # 4) bf16 outputs, forced tiled (exercises the f32-scratch accumulator).
    recon_s, feat_s = autoencoder_forward(x, W_e, W_d, b_d, b_e,
                                          resident=False,
                                          block_b=16, block_f=128,
                                          out_dtype=jnp.bfloat16,
                                          feat_dtype=jnp.bfloat16)
    jax.block_until_ready((recon_s, feat_s))
    assert jnp.allclose(recon_s.astype(jnp.float32), recon_ref, atol=1e-1, rtol=1e-1)
    assert jnp.allclose(feat_s.astype(jnp.float32), feat_ref, atol=1e-1, rtol=1e-1)

    print("KERNEL_OK")
</pallas_src>

<mosaic_0001>
module attributes {stable_mosaic.version = 11 : i64} {
  func.func @_ae_resident_kernel(%arg0: i32, %arg1: memref<16x128xf32, #tpu.memory_space<vmem>>, %arg2: memref<128x256xf32, #tpu.memory_space<vmem>>, %arg3: memref<256x128xf32, #tpu.memory_space<vmem>>, %arg4: memref<1x128xf32, #tpu.memory_space<vmem>>, %arg5: memref<1x256xf32, #tpu.memory_space<vmem>>, %arg6: memref<16x128xf32, #tpu.memory_space<vmem>>, %arg7: memref<16x256xf32, #tpu.memory_space<vmem>>) attributes {dimension_semantics = [#tpu.dimension_semantics<parallel>], iteration_bounds = array<i64: 1>, scalar_prefetch = 0 : i64, scratch_operands = 0 : i64, tpu.core_type = #tpu.core_type<tc>, window_params = [{transform_indices = @transform_0, window_bounds = array<i64: 16, 128>}, {pipeline_mode = #tpu.pipeline_mode<synchronous>, transform_indices = @transform_1, window_bounds = array<i64: 128, 256>}, {pipeline_mode = #tpu.pipeline_mode<synchronous>, transform_indices = @transform_2, window_bounds = array<i64: 256, 128>}, {pipeline_mode = #tpu.pipeline_mode<synchronous>, transform_indices = @transform_3, window_bounds = array<i64: 1, 128>}, {pipeline_mode = #tpu.pipeline_mode<synchronous>, transform_indices = @transform_4, window_bounds = array<i64: 1, 256>}, {transform_indices = @transform_5, window_bounds = array<i64: 16, 128>}, {transform_indices = @transform_6, window_bounds = array<i64: 16, 256>}]} {
    %c0 = arith.constant 0 : index
    %c0_0 = arith.constant 0 : index
    %0 = vector.load %arg1[%c0, %c0_0] : memref<16x128xf32, #tpu.memory_space<vmem>>, vector<16x128xf32>
    %c0_1 = arith.constant 0 : index
    %c0_2 = arith.constant 0 : index
    %1 = vector.load %arg2[%c0_1, %c0_2] : memref<128x256xf32, #tpu.memory_space<vmem>>, vector<128x256xf32>
    %cst = arith.constant dense<0.000000e+00> : vector<16x256xf32>
    %2 = tpu.matmul %0, %1, %cst {dimension_numbers = #tpu.dot_dimension_numbers<[1], [0], [0], [1], [0, 0, 1, 1], [], []>} : vector<16x128xf32>, vector<128x256xf32>, vector<16x256xf32> -> vector<16x256xf32>
    %c0_3 = arith.constant 0 : index
    %c0_4 = arith.constant 0 : index
    %3 = vector.load %arg5[%c0_3, %c0_4] : memref<1x256xf32, #tpu.memory_space<vmem>>, vector<1x256xf32>
    %4 = vector.broadcast %3 : vector<1x256xf32> to vector<16x256xf32>
    %5 = arith.addf %2, %4 : vector<16x256xf32>
    %cst_5 = arith.constant 0.000000e+00 : f32
    %6 = vector.broadcast %cst_5 : f32 to vector<16x256xf32>
    %7 = arith.maximumf %5, %6 : vector<16x256xf32>
    %c0_6 = arith.constant 0 : index
    %c0_7 = arith.constant 0 : index
    %8 = vector.load %arg7[%c0_6, %c0_7] : memref<16x256xf32, #tpu.memory_space<vmem>>, vector<16x256xf32>
    tpu.vector_store %arg7[%c0_6, %c0_7], %7 {strides = array<i32>} : memref<16x256xf32, #tpu.memory_space<vmem>>, vector<16x256xf32>,
    %c0_8 = arith.constant 0 : index
    %c0_9 = arith.constant 0 : index
    %9 = vector.load %arg3[%c0_8, %c0_9] : memref<256x128xf32, #tpu.memory_space<vmem>>, vector<256x128xf32>
    %cst_10 = arith.constant dense<0.000000e+00> : vector<16x128xf32>
    %10 = tpu.matmul %7, %9, %cst_10 {dimension_numbers = #tpu.dot_dimension_numbers<[1], [0], [0], [1], [0, 0, 1, 1], [], []>} : vector<16x256xf32>, vector<256x128xf32>, vector<16x128xf32> -> vector<16x128xf32>
    %c0_11 = arith.constant 0 : index
    %c0_12 = arith.constant 0 : index
    %11 = vector.load %arg4[%c0_11, %c0_12] : memref<1x128xf32, #tpu.memory_space<vmem>>, vector<1x128xf32>
    %12 = vector.broadcast %11 : vector<1x128xf32> to vector<16x128xf32>
    %13 = arith.addf %10, %12 : vector<16x128xf32>
    %c0_13 = arith.constant 0 : index
    %c0_14 = arith.constant 0 : index
    %14 = vector.load %arg6[%c0_13, %c0_14] : memref<16x128xf32, #tpu.memory_space<vmem>>, vector<16x128xf32>
    tpu.vector_store %arg6[%c0_13, %c0_14], %13 {strides = array<i32>} : memref<16x128xf32, #tpu.memory_space<vmem>>, vector<16x128xf32>,
    return
  }
  func.func @transform_0(%arg0: i32) -> (i32, i32) {
    %c0_i32 = arith.constant 0 : i32
    %c0_i32_0 = arith.constant 0 : i32
    return %arg0, %c0_i32 : i32, i32
  }
  func.func @transform_1(%arg0: i32) -> (i32, i32) {
    %c0_i32 = arith.constant 0 : i32
    %c0_i32_0 = arith.constant 0 : i32
    %c0_i32_1 = arith.constant 0 : i32
    return %c0_i32, %c0_i32_0 : i32, i32
  }
  func.func @transform_2(%arg0: i32) -> (i32, i32) {
    %c0_i32 = arith.constant 0 : i32
    %c0_i32_0 = arith.constant 0 : i32
    %c0_i32_1 = arith.constant 0 : i32
    return %c0_i32, %c0_i32_0 : i32, i32
  }
  func.func @transform_3(%arg0: i32) -> (i32, i32) {
    %c0_i32 = arith.constant 0 : i32
    %c0_i32_0 = arith.constant 0 : i32
    %c0_i32_1 = arith.constant 0 : i32
    return %c0_i32, %c0_i32_0 : i32, i32
  }
  func.func @transform_4(%arg0: i32) -> (i32, i32) {
    %c0_i32 = arith.constant 0 : i32
    %c0_i32_0 = arith.constant 0 : i32
    %c0_i32_1 = arith.constant 0 : i32
    return %c0_i32, %c0_i32_0 : i32, i32
  }
  func.func @transform_5(%arg0: i32) -> (i32, i32) {
    %c0_i32 = arith.constant 0 : i32
    %c0_i32_0 = arith.constant 0 : i32
    return %arg0, %c0_i32 : i32, i32
  }
  func.func @transform_6(%arg0: i32) -> (i32, i32) {
    %c0_i32 = arith.constant 0 : i32
    %c0_i32_0 = arith.constant 0 : i32
    return %arg0, %c0_i32 : i32, i32
  }
}

</mosaic_0001>

<bundles_post_ra>
// kernel: tpu_custom_call.1
= control target key start
LH: loop header
LB: loop body
LE: loop exit
PB: predicated region body
PF: predicated region fallthrough
CT: control target
= control target key end

     0   :  { %12 = vsyncpa [#allocation3], 0  ;;  %s505_s0 = inlined_call_operand.hbm [shape: f32[16,128], index: 0, kind: input, shape index: {}]   ;;  %s506_s1 = inlined_call_operand.hbm [shape: f32[128,256], index: 1, kind: input, shape index: {}]   ;;  %s507_s2 = inlined_call_operand.hbm [shape: f32[256,128], index: 2, kind: input, shape index: {}]   ;;  %s508_s3 = inlined_call_operand.vmem [shape: f32[1,128], index: 3, kind: input, shape index: {}]   ;;  %s509_s4 = inlined_call_operand.vmem [shape: f32[1,256], index: 4, kind: input, shape index: {}]   ;;  %s510_s5 = inlined_call_operand.hbm [shape: f32[16,128], index: 5, kind: output, shape index: {0}]   ;;  %s511_s6 = inlined_call_operand.hbm [shape: f32[16,256], index: 6, kind: output, shape index: {1}]  }
   0x1   :  { %13 = vsyncpa [#allocation6], 0 }
   0x2   :  { %14 = vsyncpa [#allocation4], 0  ;;  %s33_s23 = sshll.u32 %s506_s1, 4  ;;  %s34_s23 = int_to_ptr.hbm [resolvable:$true] %s33_s23 }
   0x3   :  { %15 = vsyncpa [#allocation10], 0  ;;  %s425_s24 = smov [#allocation5]   ;;  %s20_s28 = sshll.u32 %s505_s0, 4  ;;  %s21_s28 = int_to_ptr.hbm [resolvable:$true] %s20_s28 }
   0x4   :  { %s35_s25 = sshll.u32 %s425_s24, 4  ;;  %s426_s29 = smov 256   ;;  %s36_s25 = int_to_ptr.vmem [resolvable:$true] %s35_s25 }
   0x5   :  { %s427_s30 = smov 16   ;;  %s428_s7 = smov [#allocation2]  }
   0x6   :  { %41 = dma.hbm_to_vmem [thread:$0]  %s34_s23, 4096, %s36_s25, [#allocation6], %s426_s29, %s426_s29, %s427_s30  }
   0x7   :  { %s22_s8 = sshll.u32 %s428_s7, 4  ;;  %s429_s1 = smov 128   ;;  %s23_s8 = int_to_ptr.vmem [resolvable:$true] %s22_s8 }
   0x8   :  { %s430_s9 = smov 8   ;;  %s46_s0 = sshll.u32 %s507_s2, 4  ;;  %s47_s0 = int_to_ptr.hbm [resolvable:$true] %s46_s0 }
   0x9   :  { %28 = dma.hbm_to_vmem [thread:$0]  %s21_s28, 256, %s23_s8, [#allocation3], %s429_s1, %s429_s1, %s430_s9  }
   0xa   :  { %s431_s12 = smov [#allocation7]  }
   0xb   :  { %s48_s13 = sshll.u32 %s431_s12, 4  ;;  %s49_s13 = int_to_ptr.vmem [resolvable:$true] %s48_s13 }
   0xc   :  { %54 = dma.hbm_to_vmem [thread:$0]  %s47_s0, 4096, %s49_s13, [#allocation6], %s429_s1, %s429_s1, %s430_s9  }
   0xd   :  { %417 = dma.done.wait [#allocation3], 256  }
   0xe   :  { %418 = vsyncadd [#allocation3], 4294967040 }
   0xf   :  { %419 = dma.done.wait [#allocation6], 8192  }
  0x10   :  { %420 = vsyncadd [#allocation6], 4294959104  ;;  %v103_v0 = vld [vmem:[#allocation5 + $0xf0] sm:$0xff]  ;;  %v101_v1 = vld [vmem:[#allocation5 + $0xe0] sm:$0xff]  ;;  %s268_s18 = sshll.u32 %s511_s6, 4  ;;  %s433_s21 = smov [#allocation8]   ;;  %s269_s18 = int_to_ptr.hbm [resolvable:$true] %s268_s18 }
  0x11   :  { %v104_v2 = vld [vmem:[#allocation5 + $0xf8] sm:$0xff]  ;;  %111 = vmatpush.msra.mxu0 %v103_v0  ;;  %v102_v3 = vld [vmem:[#allocation5 + $0xe8] sm:$0xff]  ;;  %v99_v4 = vld [vmem:[#allocation5 + $0xd0] sm:$0xff]  ;;  %s253_s22 = sshll.u32 %s433_s21, 4  ;;  %s255_s24 = sshll.u32 %s510_s5, 4  ;;  %s254_s22 = int_to_ptr.vmem [resolvable:$true] %s253_s22  ;;  %s256_s24 = int_to_ptr.hbm [resolvable:$true] %s255_s24 }
  0x12   :  { %134 = vmatpush.msra.mxu1 %v104_v2  ;;  %v100_v5 = vld [vmem:[#allocation5 + $0xd8] sm:$0xff]  ;;  %v97_v6 = vld [vmem:[#allocation5 + $0xc0] sm:$0xff]  ;;  %v98_v7 = vld [vmem:[#allocation5 + $0xc8] sm:$0xff] }
  0x13   :  { %112 = vmatpush.msra.mxu0 %v101_v1  ;;  %v95_v8 = vld [vmem:[#allocation5 + $0xb0] sm:$0xff]  ;;  %v96_v9 = vld [vmem:[#allocation5 + $0xb8] sm:$0xff]  ;;  %v93_v10 = vld [vmem:[#allocation5 + $0xa0] sm:$0xff] }
  0x14   :  { %135 = vmatpush.msra.mxu1 %v102_v3  ;;  %v94_v11 = vld [vmem:[#allocation5 + $0xa8] sm:$0xff]  ;;  %v91_v12 = vld [vmem:[#allocation5 + $0x90] sm:$0xff]  ;;  %v92_v13 = vld [vmem:[#allocation5 + $0x98] sm:$0xff] }
  0x15   :  { %113 = vmatpush.msra.mxu0 %v99_v4  ;;  %v180_v14 = vld [vmem:[#allocation7 + $0x78] sm:$0xff]  ;;  %v179_v15 = vld [vmem:[#allocation7 + $0x70] sm:$0xff]  ;;  %v89_v16 = vld [vmem:[#allocation5 + $0x80] sm:$0xff] }
  0x16   :  { %136 = vmatpush.msra.mxu1 %v100_v5  ;;  %v90_v17 = vld [vmem:[#allocation5 + $0x88] sm:$0xff]  ;;  %201 = vmatpush.msra.mxu2 %v180_v14  ;;  %v196_v18 = vld [vmem:[#allocation7 + $0xf8] sm:$0xff]  ;;  %v195_v20 = vld [vmem:[#allocation7 + $0xf0] sm:$0xff] }
  0x17   :  { %114 = vmatpush.msra.mxu0 %v97_v6  ;;  %v178_v19 = vld [vmem:[#allocation7 + $0x68] sm:$0xff]  ;;  %v87_v21 = vld [vmem:[#allocation5 + $0x70] sm:$0xff]  ;;  %v88_v22 = vld [vmem:[#allocation5 + $0x78] sm:$0xff]  ;;  %224 = vmatpush.msra.mxu3 %v196_v18 }
  0x18   :  { %137 = vmatpush.msra.mxu1 %v98_v7  ;;  %202 = vmatpush.msra.mxu2 %v179_v15  ;;  %v177_v23 = vld [vmem:[#allocation7 + $0x60] sm:$0xff]  ;;  %v194_v24 = vld [vmem:[#allocation7 + $0xe8] sm:$0xff]  ;;  %v176_v27 = vld [vmem:[#allocation7 + $0x58] sm:$0xff] }
  0x19   :  { %115 = vmatpush.msra.mxu0 %v95_v8  ;;  %v85_v25 = vld [vmem:[#allocation5 + $0x60] sm:$0xff]  ;;  %v86_v26 = vld [vmem:[#allocation5 + $0x68] sm:$0xff]  ;;  %225 = vmatpush.msra.mxu3 %v195_v20  ;;  %v83_v29 = vld [vmem:[#allocation5 + $0x50] sm:$0xff] }
  0x1a   :  { %138 = vmatpush.msra.mxu1 %v96_v9  ;;  %203 = vmatpush.msra.mxu2 %v178_v19  ;;  %v193_v28 = vld [vmem:[#allocation7 + $0xe0] sm:$0xff]  ;;  %v84_v30 = vld [vmem:[#allocation5 + $0x58] sm:$0xff]  ;;  %v175_v31 = vld [vmem:[#allocation7 + $0x50] sm:$0xff] }
  0x1b   :  { %116 = vmatpush.msra.mxu0 %v93_v10  ;;  %226 = vmatpush.msra.mxu3 %v194_v24  ;;  %v192_v32 = vld [vmem:[#allocation7 + $0xd8] sm:$0xff]  ;;  %v81_v33 = vld [vmem:[#allocation5 + $0x40] sm:$0xff]  ;;  %v82_v34 = vld [vmem:[#allocation5 + $0x48] sm:$0xff] }
  0x1c   :  { %139 = vmatpush.msra.mxu1 %v94_v11  ;;  %204 = vmatpush.msra.mxu2 %v177_v23  ;;  %v174_v35 = vld [vmem:[#allocation7 + $0x48] sm:$0xff]  ;;  %v191_v36 = vld [vmem:[#allocation7 + $0xd0] sm:$0xff]  ;;  %v80_v38 = vld [vmem:[#allocation5 + $0x38] sm:$0xff] }
  0x1d   :  { %117 = vmatpush.msra.mxu0 %v91_v12  ;;  %227 = vmatpush.msra.mxu3 %v193_v28  ;;  %v79_v37 = vld [vmem:[#allocation5 + $0x30] sm:$0xff]  ;;  %v173_v39 = vld [vmem:[#allocation7 + $0x40] sm:$0xff]  ;;  %v190_v40 = vld [vmem:[#allocation7 + $0xc8] sm:$0xff] }
  0x1e   :  { %140 = vmatpush.msra.mxu1 %v92_v13  ;;  %205 = vmatpush.msra.mxu2 %v176_v27  ;;  %v77_v41 = vld [vmem:[#allocation5 + $0x20] sm:$0xff]  ;;  %v78_v42 = vld [vmem:[#allocation5 + $0x28] sm:$0xff]  ;;  %v172_v43 = vld [vmem:[#allocation7 + $0x38] sm:$0xff] }
  0x1f   :  { %118 = vmatpush.msra.mxu0 %v89_v16  ;;  %228 = vmatpush.msra.mxu3 %v192_v32  ;;  %v189_v44 = vld [vmem:[#allocation7 + $0xc0] sm:$0xff]  ;;  %v75_v45 = vld [vmem:[#allocation5 + $0x10] sm:$0xff]  ;;  %v76_v46 = vld [vmem:[#allocation5 + $0x18] sm:$0xff] }
  0x20   :  { %141 = vmatpush.msra.mxu1 %v90_v17  ;;  %206 = vmatpush.msra.mxu2 %v175_v31  ;;  %v171_v47 = vld [vmem:[#allocation7 + $0x30] sm:$0xff]  ;;  %v188_v48 = vld [vmem:[#allocation7 + $0xb8] sm:$0xff]  ;;  %v73_v49 = vld [vmem:[#allocation5] sm:$0xff] }
  0x21   :  { %119 = vmatpush.msra.mxu0 %v87_v21  ;;  %229 = vmatpush.msra.mxu3 %v191_v36  ;;  %v74_v50 = vld [vmem:[#allocation5 + $0x8] sm:$0xff]  ;;  %v71_v51 = vld [vmem:[#allocation2] sm:$0xff]  ;;  %v169_v54 = vld [vmem:[#allocation7 + $0x20] sm:$0xff] }
  0x22   :  { %142 = vmatpush.msra.mxu1 %v88_v22  ;;  %207 = vmatpush.msra.mxu2 %v174_v35  ;;  %v170_v52 = vld [vmem:[#allocation7 + $0x28] sm:$0xff]  ;;  %v187_v53 = vld [vmem:[#allocation7 + $0xb0] sm:$0xff]  ;;  %v168_v56 = vld [vmem:[#allocation7 + $0x18] sm:$0xff] }
  0x23   :  { %120 = vmatpush.msra.mxu0 %v85_v25  ;;  %230 = vmatpush.msra.mxu3 %v190_v40  ;;  %v186_v55 = vld [vmem:[#allocation7 + $0xa8] sm:$0xff]  ;;  %v185_v57 = vld [vmem:[#allocation7 + $0xa0] sm:$0xff]  ;;  %v72_v58 = vld [vmem:[#allocation2 + $0x8] sm:$0xff] }
  0x24   :  { %143 = vmatpush.msra.mxu1 %v86_v26  ;;  %208 = vmatpush.msra.mxu2 %v173_v39  ;;  %v167_v59 = vld [vmem:[#allocation7 + $0x10] sm:$0xff]  ;;  %v184_v60 = vld [vmem:[#allocation7 + $0x98] sm:$0xff]  ;;  %v166_v61 = vld [vmem:[#allocation7 + $0x8] sm:$0xff] }
  0x25   :  { %121 = vmatpush.msra.mxu0 %v83_v29  ;;  %231 = vmatpush.msra.mxu3 %v189_v44  ;;  %v183_v62 = vld [vmem:[#allocation7 + $0x90] sm:$0xff]  ;;  %v165_v63 = vld [vmem:[#allocation7] sm:$0xff]  ;;  %v182_v0 = vld [vmem:[#allocation7 + $0x88] sm:$0xff] }
  0x26   :  { %144 = vmatpush.msra.mxu1 %v84_v30  ;;  %209 = vmatpush.msra.mxu2 %v172_v43  ;;  %v181_v1 = vld [vmem:[#allocation7 + $0x80] sm:$0xff]  ;;  %v105_v2 = vld [vmem:[%s509_s4] sm:$0x3]  ;;  %s432_s4 = smov [#allocation9]  }
  0x27   :  { %122 = vmatpush.msra.mxu0 %v81_v33  ;;  %232 = vmatpush.msra.mxu3 %v188_v48  ;;  %v107_v3 = vperm.slane %v105_v2, 0  ;;  %v108_v4 = vperm.slane %v105_v2, 1  ;;  %s266_s15 = sshll.u32 %s432_s4, 4  ;;  %v296_v17 = vld [vmem:[%s508_s3] ss:$0 sm:$0xff]  ;;  %s267_s15 = int_to_ptr.vmem [resolvable:$true] %s266_s15 }
  0x28   :  { %145 = vmatpush.msra.mxu1 %v82_v34  ;;  %210 = vmatpush.msra.mxu2 %v171_v47 }
  0x29   :  { %123 = vmatpush.msra.mxu0 %v79_v37  ;;  %233 = vmatpush.msra.mxu3 %v187_v53 }
  0x2a   :  { %146 = vmatpush.msra.mxu1 %v80_v38  ;;  %211 = vmatpush.msra.mxu2 %v170_v52 }
  0x2b   :  { %124 = vmatpush.msra.mxu0 %v77_v41  ;;  %234 = vmatpush.msra.mxu3 %v186_v55 }
  0x2c   :  { %147 = vmatpush.msra.mxu1 %v78_v42  ;;  %212 = vmatpush.msra.mxu2 %v169_v54 }
  0x2d   :  { %125 = vmatpush.msra.mxu0 %v75_v45  ;;  %235 = vmatpush.msra.mxu3 %v185_v57 }
  0x2e   :  { %148 = vmatpush.msra.mxu1 %v76_v46  ;;  %213 = vmatpush.msra.mxu2 %v168_v56 }
  0x2f   :  { %126 = vmatpush.msra.mxu0 %v73_v49  ;;  %236 = vmatpush.msra.mxu3 %v184_v60 }
  0x30   :  { %149 = vmatpush.msra.mxu1 %v74_v50  ;;  %127 = vmatmul.f32.vlgmr.msra.gmra.mxu0 %v71_v51 }
  0x31   :  { %150 = vmatmul.f32.vlgmr.msra.gmra.mxu1 %v71_v51  ;;  %214 = vmatpush.msra.mxu2 %v167_v59 }
  0x32   :  { %237 = vmatpush.msra.mxu3 %v183_v62 }
  0x33   :  { %215 = vmatpush.msra.mxu2 %v166_v61 }
  0x34   :  { %238 = vmatpush.msra.mxu3 %v182_v0 }
  0x35   :  { %216 = vmatpush.msra.mxu2 %v165_v63 }
  0x36   :  { %239 = vmatpush.msra.mxu3 %v181_v1 }
  0x38   :  { %130 = vmatmul.f32.gmra.mxu0 %v72_v58 }
  0x39   :  { %153 = vmatmul.f32.gmra.mxu1 %v72_v58 }
  0xad   :  { %v128_v5 = vpop.f32.mrf.mxu0 }
  0xae   :  { %v151_v6 = vpop.f32.mrf.mxu1  ;;  %v129_v7 = vadd.f32 %v128_v5, %v107_v3 }
  0xaf   :  { %v152_v8 = vadd.f32 %v151_v6, %v108_v4 }
  0xb0   :  { %v157_v9 = vmax.f32 %v129_v7, 0.0 }
  0xb1   :  { %v158_v10 = vmax.f32 %v152_v8, 0.0 }
  0xb2   :  { %161 = vst [vmem:[#allocation9] sm:$0xff] %v157_v9  ;;  %217 = vmatmul.f32.vlgmr.msra.gmra.mxu2 %v157_v9 }
  0xb3   :  { %240 = vmatmul.f32.vlgmr.msra.gmra.mxu3 %v158_v10  ;;  %162 = vst [vmem:[#allocation9 + $0x8] sm:$0xff] %v158_v10 }
  0xb5   :  { %v131_v11 = vpop.f32.mrf.mxu0 }
  0xb6   :  { %v154_v12 = vpop.f32.mrf.mxu1  ;;  %v132_v13 = vadd.f32 %v131_v11, %v107_v3 }
  0xb7   :  { %v155_v14 = vadd.f32 %v154_v12, %v108_v4 }
  0xb8   :  { %v159_v15 = vmax.f32 %v132_v13, 0.0 }
  0xb9   :  { %v160_v16 = vmax.f32 %v155_v14, 0.0 }
  0xba   :  { %163 = vst [vmem:[#allocation9 + $0x10] sm:$0xff] %v159_v15  ;;  %220 = vmatmul.f32.gmra.mxu2 %v159_v15 }
  0xbb   :  { %243 = vmatmul.f32.gmra.mxu3 %v160_v16  ;;  %164 = vst [vmem:[#allocation9 + $0x18] sm:$0xff] %v160_v16 }
  0xbc   :  { %274 = dma.vmem_to_hbm [thread:$0]  %s267_s15, 512, %s269_s18, [#allocation10], %s426_s29, %s426_s29, %s427_s30  }
 0x135   :  { %v218_v18 = vpop.f32.mrf.mxu2 }
 0x136   :  { %v241_v19 = vpop.f32.mrf.mxu3  ;;  %v219_v20 = vadd.f32 %v296_v17, %v218_v18 }
 0x138   :  { %v242_v21 = vadd.f32 %v241_v19, %v219_v20 }
 0x13a   :  { %247 = vst [vmem:[#allocation8] sm:$0xff] %v242_v21 }
 0x13d   :  { %v221_v22 = vpop.f32.mrf.mxu2 }
 0x13e   :  { %v244_v23 = vpop.f32.mrf.mxu3  ;;  %v222_v24 = vadd.f32 %v296_v17, %v221_v22 }
 0x140   :  { %v245_v25 = vadd.f32 %v244_v23, %v222_v24 }
 0x142   :  { %248 = vst [vmem:[#allocation8 + $0x8] sm:$0xff] %v245_v25 }
 0x143   :  { %261 = dma.vmem_to_hbm [thread:$0]  %s254_s22, 256, %s256_s24, [#allocation4], %s429_s1, %s429_s1, %s430_s9  }
 0x144   :  { %421 = dma.done.wait [#allocation4], 256  }
 0x145   :  { %422 = vsyncadd [#allocation4], 4294967040 }
 0x146   :  { %423 = dma.done.wait [#allocation10], 512  }
 0x147   :  { %424 = vsyncadd [#allocation10], 4294966784 }
 0x148   :  { %283 = vsyncpa [#allocation3], 1 }
 0x149   :  { %284 = vsyncpa [#allocation6], 1 }
 0x14a   :  { %285 = vsyncpa [#allocation4], 1 }
 0x14b   :  { %286 = vsyncpa [#allocation10], 1 }

</bundles_post_ra>
